<compile_context>
chip_gen: v7x
topology: tpu7x:2x2x1
jax: 0.10.0
libtpu: 0.0.40
codegen_flags: <defaults>
</compile_context>

<pallas_src>
import functools

import jax
import jax.numpy as jnp
import numpy as np
from jax.experimental import pallas as pl
from jax.experimental.pallas import tpu as pltpu


def _round_up(x, m):
    return ((x + m - 1) // m) * m


def _make_kernel(mean, std):
    m0, m1, m2, m3 = mean
    s0, s1, s2, s3 = std

    def kernel(in_ref, out_ref):
        # in_ref : (8, tn)  rows: x1, y1, x2, y2, dx, dy, dw, dh
        # out_ref: (4, tn)  rows: x1, y1, x2, y2 (predicted)
        x1 = in_ref[0:1, :]
        y1 = in_ref[1:2, :]
        x2 = in_ref[2:3, :]
        y2 = in_ref[3:4, :]

        dx = in_ref[4:5, :] * s0 + m0
        dy = in_ref[5:6, :] * s1 + m1
        dw = in_ref[6:7, :] * s2 + m2
        dh = in_ref[7:8, :] * s3 + m3

        widths = x2 - x1
        heights = y2 - y1
        ctr_x = x1 + 0.5 * widths
        ctr_y = y1 + 0.5 * heights

        pred_ctr_x = ctr_x + dx * widths
        pred_ctr_y = ctr_y + dy * heights
        half_w = 0.5 * (jnp.exp(dw) * widths)   # exp -> EUP slot, essentially free
        half_h = 0.5 * (jnp.exp(dh) * heights)

        out_ref[0:1, :] = pred_ctr_x - half_w
        out_ref[1:2, :] = pred_ctr_y - half_h
        out_ref[2:3, :] = pred_ctr_x + half_w
        out_ref[3:4, :] = pred_ctr_y + half_h

    return kernel


def bbox_transform_packed(packed, mean, std, *, tn_max=16384):
    """Transpose-free fast path.

    packed: (8, M) float32, rows 0..3 = box x1,y1,x2,y2 ; rows 4..7 = deltas.
    Returns (4, M) float32 predicted boxes.  M must be a multiple of 128.
    """
    eight, M = packed.shape
    assert eight == 8 and M % 128 == 0

    # Largest lane tile that (a) divides the (already padded) extent and
    # (b) stays small in VMEM.  Footprint per step (double buffered, in+out,
    # sublane-padded to 8): 2 * (8*tn + 8*tn) * 4B = 128*tn bytes -> ~2 MiB at
    # tn=16384, comfortably under the scoped-VMEM default on v5e/v6e/v7x.
    tn = min(tn_max, M)
    while M % tn != 0:          # M is a multiple of 128, so this terminates
        tn -= 128
    grid = (M // tn,)

    kernel = _make_kernel(mean, std)
    return pl.pallas_call(
        kernel,
        out_shape=jax.ShapeDtypeStruct((4, M), jnp.float32),
        grid_spec=pltpu.PrefetchScalarGridSpec(
            num_scalar_prefetch=0,
            grid=grid,
            in_specs=[pl.BlockSpec((8, tn), lambda i: (0, i))],
            out_specs=pl.BlockSpec((4, tn), lambda i: (0, i)),
        ),
        compiler_params=pltpu.CompilerParams(
            dimension_semantics=("parallel",)),
    )(packed)


def bbox_transform(boxes, deltas, mean=None, std=None, *, tn_max=16384):
    """boxes, deltas: (B, N, 4) float32.  Returns (B, N, 4) float32.

    Matches the PyTorch BBoxTransform.forward exactly (no dw/dh clamp, as in
    the reference module).
    """
    if mean is None:
        mean = (0.0, 0.0, 0.0, 0.0)
    if std is None:
        std = (0.1, 0.1, 0.2, 0.2)
    # mean/std are fixed module parameters -> bake as compile-time constants.
    mean = tuple(float(v) for v in np.asarray(mean, dtype=np.float32))
    std = tuple(float(v) for v in np.asarray(std, dtype=np.float32))

    B, N, C = boxes.shape
    assert C == 4 and deltas.shape == (B, N, 4)

    total = B * N
    # Pick a tile, then pad total up to a multiple of it (dummy zero boxes are
    # numerically safe: widths=0, exp(0)=1 -> finite, and get sliced off).
    tn = min(tn_max, _round_up(total, 128))
    total_p = _round_up(total, tn)

    # One layout-changing pass: (B*N, 8) interleaved -> (8, B*N) lane-dense.
    # Callers that can keep this layout should use bbox_transform_packed()
    # directly and skip both conversions.
    packed = jnp.concatenate(
        [boxes.reshape(total, 4), deltas.reshape(total, 4)], axis=1).T
    if total_p != total:
        packed = jnp.pad(packed, ((0, 0), (0, total_p - total)))

    out_packed = bbox_transform_packed(packed, mean, std, tn_max=tn_max)
    return out_packed[:, :total].T.reshape(B, N, 4)


def _reference(boxes, deltas, mean, std):
    widths = boxes[:, :, 2] - boxes[:, :, 0]
    heights = boxes[:, :, 3] - boxes[:, :, 1]
    ctr_x = boxes[:, :, 0] + 0.5 * widths
    ctr_y = boxes[:, :, 1] + 0.5 * heights
    dx = deltas[:, :, 0] * std[0] + mean[0]
    dy = deltas[:, :, 1] * std[1] + mean[1]
    dw = deltas[:, :, 2] * std[2] + mean[2]
    dh = deltas[:, :, 3] * std[3] + mean[3]
    pred_ctr_x = ctr_x + dx * widths
    pred_ctr_y = ctr_y + dy * heights
    pred_w = jnp.exp(dw) * widths
    pred_h = jnp.exp(dh) * heights
    return jnp.stack(
        [pred_ctr_x - 0.5 * pred_w, pred_ctr_y - 0.5 * pred_h,
         pred_ctr_x + 0.5 * pred_w, pred_ctr_y + 0.5 * pred_h], axis=2)


if __name__ == "__main__":
    key = jax.random.PRNGKey(0)
    mean = jnp.array([0.0, 0.0, 0.0, 0.0], dtype=jnp.float32)
    std = jnp.array([0.1, 0.1, 0.2, 0.2], dtype=jnp.float32)

    # Small, deterministic cases; N=300 deliberately NOT lane/tile aligned to
    # exercise the padding path.
    for (B, N) in [(2, 300), (2, 1024)]:
        k1, k2, k3, key = jax.random.split(key, 4)
        xy1 = jax.random.uniform(k1, (B, N, 2), jnp.float32, 0.0, 50.0)
        wh = jax.random.uniform(k2, (B, N, 2), jnp.float32, 1.0, 30.0)
        boxes = jnp.concatenate([xy1, xy1 + wh], axis=2)        # (B, N, 4)
        deltas = jax.random.normal(k3, (B, N, 4), jnp.float32)  # (B, N, 4)

        out = bbox_transform(boxes, deltas, mean, std)
        out = jax.block_until_ready(out)

        ref = _reference(boxes, deltas, mean, std)
        assert out.shape == (B, N, 4) and out.dtype == jnp.float32
        assert jnp.allclose(out, ref, atol=1e-5, rtol=1e-5), \
            f"mismatch vs reference for shape {(B, N)}"

    print("KERNEL_OK")
</pallas_src>

<mosaic_0001>
module attributes {stable_mosaic.version = 11 : i64} {
  func.func @kernel(%arg0: i32, %arg1: memref<8x640xf32, #tpu.memory_space<vmem>>, %arg2: memref<4x640xf32, #tpu.memory_space<vmem>>) attributes {dimension_semantics = [#tpu.dimension_semantics<parallel>], iteration_bounds = array<i64: 1>, scalar_prefetch = 0 : i64, scratch_operands = 0 : i64, tpu.core_type = #tpu.core_type<tc>, window_params = [{transform_indices = @transform_0, window_bounds = array<i64: 8, 640>}, {transform_indices = @transform_1, window_bounds = array<i64: 4, 640>}]} {
    %c0 = arith.constant 0 : index
    %c0_0 = arith.constant 0 : index
    %0 = vector.load %arg1[%c0, %c0_0] : memref<8x640xf32, #tpu.memory_space<vmem>>, vector<1x640xf32>
    %c1 = arith.constant 1 : index
    %c0_1 = arith.constant 0 : index
    %1 = vector.load %arg1[%c1, %c0_1] : memref<8x640xf32, #tpu.memory_space<vmem>>, vector<1x640xf32>
    %c2 = arith.constant 2 : index
    %c0_2 = arith.constant 0 : index
    %2 = vector.load %arg1[%c2, %c0_2] : memref<8x640xf32, #tpu.memory_space<vmem>>, vector<1x640xf32>
    %c3 = arith.constant 3 : index
    %c0_3 = arith.constant 0 : index
    %3 = vector.load %arg1[%c3, %c0_3] : memref<8x640xf32, #tpu.memory_space<vmem>>, vector<1x640xf32>
    %c4 = arith.constant 4 : index
    %c0_4 = arith.constant 0 : index
    %4 = vector.load %arg1[%c4, %c0_4] : memref<8x640xf32, #tpu.memory_space<vmem>>, vector<1x640xf32>
    %cst = arith.constant 1.000000e-01 : f32
    %5 = vector.broadcast %cst : f32 to vector<1x640xf32>
    %6 = arith.mulf %4, %5 : vector<1x640xf32>
    %cst_5 = arith.constant 0.000000e+00 : f32
    %7 = vector.broadcast %cst_5 : f32 to vector<1x640xf32>
    %8 = arith.addf %6, %7 : vector<1x640xf32>
    %c5 = arith.constant 5 : index
    %c0_6 = arith.constant 0 : index
    %9 = vector.load %arg1[%c5, %c0_6] : memref<8x640xf32, #tpu.memory_space<vmem>>, vector<1x640xf32>
    %cst_7 = arith.constant 1.000000e-01 : f32
    %10 = vector.broadcast %cst_7 : f32 to vector<1x640xf32>
    %11 = arith.mulf %9, %10 : vector<1x640xf32>
    %cst_8 = arith.constant 0.000000e+00 : f32
    %12 = vector.broadcast %cst_8 : f32 to vector<1x640xf32>
    %13 = arith.addf %11, %12 : vector<1x640xf32>
    %c6 = arith.constant 6 : index
    %c0_9 = arith.constant 0 : index
    %14 = vector.load %arg1[%c6, %c0_9] : memref<8x640xf32, #tpu.memory_space<vmem>>, vector<1x640xf32>
    %cst_10 = arith.constant 2.000000e-01 : f32
    %15 = vector.broadcast %cst_10 : f32 to vector<1x640xf32>
    %16 = arith.mulf %14, %15 : vector<1x640xf32>
    %cst_11 = arith.constant 0.000000e+00 : f32
    %17 = vector.broadcast %cst_11 : f32 to vector<1x640xf32>
    %18 = arith.addf %16, %17 : vector<1x640xf32>
    %c7 = arith.constant 7 : index
    %c0_12 = arith.constant 0 : index
    %19 = vector.load %arg1[%c7, %c0_12] : memref<8x640xf32, #tpu.memory_space<vmem>>, vector<1x640xf32>
    %cst_13 = arith.constant 2.000000e-01 : f32
    %20 = vector.broadcast %cst_13 : f32 to vector<1x640xf32>
    %21 = arith.mulf %19, %20 : vector<1x640xf32>
    %cst_14 = arith.constant 0.000000e+00 : f32
    %22 = vector.broadcast %cst_14 : f32 to vector<1x640xf32>
    %23 = arith.addf %21, %22 : vector<1x640xf32>
    %24 = arith.subf %2, %0 : vector<1x640xf32>
    %25 = arith.subf %3, %1 : vector<1x640xf32>
    %cst_15 = arith.constant 5.000000e-01 : f32
    %26 = vector.broadcast %cst_15 : f32 to vector<1x640xf32>
    %27 = arith.mulf %26, %24 : vector<1x640xf32>
    %28 = arith.addf %0, %27 : vector<1x640xf32>
    %cst_16 = arith.constant 5.000000e-01 : f32
    %29 = vector.broadcast %cst_16 : f32 to vector<1x640xf32>
    %30 = arith.mulf %29, %25 : vector<1x640xf32>
    %31 = arith.addf %1, %30 : vector<1x640xf32>
    %32 = arith.mulf %8, %24 : vector<1x640xf32>
    %33 = arith.addf %28, %32 : vector<1x640xf32>
    %34 = arith.mulf %13, %25 : vector<1x640xf32>
    %35 = arith.addf %31, %34 : vector<1x640xf32>
    %36 = math.exp %18 : vector<1x640xf32>
    %37 = arith.mulf %36, %24 : vector<1x640xf32>
    %cst_17 = arith.constant 5.000000e-01 : f32
    %38 = vector.broadcast %cst_17 : f32 to vector<1x640xf32>
    %39 = arith.mulf %38, %37 : vector<1x640xf32>
    %40 = math.exp %23 : vector<1x640xf32>
    %41 = arith.mulf %40, %25 : vector<1x640xf32>
    %cst_18 = arith.constant 5.000000e-01 : f32
    %42 = vector.broadcast %cst_18 : f32 to vector<1x640xf32>
    %43 = arith.mulf %42, %41 : vector<1x640xf32>
    %44 = arith.subf %33, %39 : vector<1x640xf32>
    %c0_19 = arith.constant 0 : index
    %c0_20 = arith.constant 0 : index
    %45 = vector.load %arg2[%c0_19, %c0_20] : memref<4x640xf32, #tpu.memory_space<vmem>>, vector<1x640xf32>
    tpu.vector_store %arg2[%c0_19, %c0_20], %44 {strides = array<i32>} : memref<4x640xf32, #tpu.memory_space<vmem>>, vector<1x640xf32>,
    %46 = arith.subf %35, %43 : vector<1x640xf32>
    %c1_21 = arith.constant 1 : index
    %c0_22 = arith.constant 0 : index
    %47 = vector.load %arg2[%c1_21, %c0_22] : memref<4x640xf32, #tpu.memory_space<vmem>>, vector<1x640xf32>
    tpu.vector_store %arg2[%c1_21, %c0_22], %46 {strides = array<i32>} : memref<4x640xf32, #tpu.memory_space<vmem>>, vector<1x640xf32>,
    %48 = arith.addf %33, %39 : vector<1x640xf32>
    %c2_23 = arith.constant 2 : index
    %c0_24 = arith.constant 0 : index
    %49 = vector.load %arg2[%c2_23, %c0_24] : memref<4x640xf32, #tpu.memory_space<vmem>>, vector<1x640xf32>
    tpu.vector_store %arg2[%c2_23, %c0_24], %48 {strides = array<i32>} : memref<4x640xf32, #tpu.memory_space<vmem>>, vector<1x640xf32>,
    %50 = arith.addf %35, %43 : vector<1x640xf32>
    %c3_25 = arith.constant 3 : index
    %c0_26 = arith.constant 0 : index
    %51 = vector.load %arg2[%c3_25, %c0_26] : memref<4x640xf32, #tpu.memory_space<vmem>>, vector<1x640xf32>
    tpu.vector_store %arg2[%c3_25, %c0_26], %50 {strides = array<i32>} : memref<4x640xf32, #tpu.memory_space<vmem>>, vector<1x640xf32>,
    return
  }
  func.func @transform_0(%arg0: i32) -> (i32, i32) {
    %c0_i32 = arith.constant 0 : i32
    %c0_i32_0 = arith.constant 0 : i32
    return %c0_i32, %arg0 : i32, i32
  }
  func.func @transform_1(%arg0: i32) -> (i32, i32) {
    %c0_i32 = arith.constant 0 : i32
    %c0_i32_0 = arith.constant 0 : i32
    return %c0_i32, %arg0 : i32, i32
  }
}

</mosaic_0001>

<bundles_post_ra>
// kernel: tpu_custom_call.1
= control target key start
LH: loop header
LB: loop body
LE: loop exit
PB: predicated region body
PF: predicated region fallthrough
CT: control target
= control target key end

     0   :  { %6 = vsyncpa [#allocation3], 0  ;;  %s198_s0 = inlined_call_operand.hbm [shape: f32[8,640], index: 0, kind: input, shape index: {}]   ;;  %s199_s1 = inlined_call_operand.hbm [shape: f32[4,640], index: 1, kind: output, shape index: {}]  }
   0x1   :  { %7 = vsyncpa [#allocation4], 0  ;;  %s162_s6 = smov [#allocation2]   ;;  %s114_s10 = scalar_lea.hbm %s198_s0, 640 }
   0x2   :  { %s14_s7 = sshll.u32 %s162_s6, 4  ;;  %p115_p0 = scmp.ne.s32.totalorder %s198_s0, %s114_s10  ;;  %s15_s7 = int_to_ptr.vmem [resolvable:$true] %s14_s7 }
   0x3   :  { %p118_p1 = scmp.lt.u32.totalorder %s114_s10, %s198_s0 }
   0x5   :  { %p120_p2 = pnand %p118_p1, %p115_p0 }
   0x7   :  { %123 = shalt.err (!%p120_p2)
}
   0x8   :  { %s124_s15 = scalar_lea.vmem %s15_s7, 640  ;;  %p129_p4 = scmp.lt.s32.totalorder %s15_s7, %s15_s7 }
   0x9   :  { %p125_p3 = scmp.ne.s32.totalorder %s15_s7, %s124_s15  ;;  %p130_p5 = scmp.lt.s32.totalorder %s124_s15, %s124_s15 }
   0xb   :  { %p131_p6 = por %p130_p5, %p129_p4 }
   0xd   :  { %p132_p7 = pnand %p131_p6, %p125_p3 }
   0xf   :  { %135 = shalt.err (!%p132_p7)
}
  0x10   :  { %17 = dma.hbm_to_vmem [thread:$0]  %s198_s0, 640, %s15_s7, [#allocation3]  }
  0x11   :  { %158 = dma.done.wait [#allocation3], 640  }
  0x12   :  { %159 = vsyncadd [#allocation3], 4294966656  ;;  %v21_v0 = vld [vmem:[#allocation2] ss:$8 sm:$0xf]  ;;  %v79_v37 = vlaneseq  ;;  %s163_s0 = smov [#allocation5]  }
  0x13   :  { %v22_v1 = vld [vmem:[#allocation2] ss:$8 sm:$0x10]  ;;  %v29_v2 = vld [vmem:[#allocation2 + $0x2] ss:$8 sm:$0xf] }
  0x14   :  { %v30_v3 = vld [vmem:[#allocation2 + $0x2] ss:$8 sm:$0x10]  ;;  %v49_v4 = vld [vmem:[#allocation2 + $0x6] ss:$8 sm:$0xf]  ;;  %v23_v7 = vor.u32 %v22_v1, %v21_v0 }
  0x15   :  { %v50_v5 = vld [vmem:[#allocation2 + $0x6] ss:$8 sm:$0x10]  ;;  %v31_v8 = vor.u32 %v30_v3, %v29_v2  ;;  %v37_v9 = vld [vmem:[#allocation2 + $0x4] ss:$8 sm:$0xf] }
  0x16   :  { %v51_v6 = vor.u32 %v50_v5, %v49_v4  ;;  %v38_v10 = vld [vmem:[#allocation2 + $0x4] ss:$8 sm:$0x10]  ;;  %v25_v12 = vld [vmem:[#allocation2 + $0x1] ss:$8 sm:$0xf] }
  0x17   :  { %v26_v13 = vld [vmem:[#allocation2 + $0x1] ss:$8 sm:$0x10]  ;;  %v33_v14 = vld [vmem:[#allocation2 + $0x3] ss:$8 sm:$0xf]  ;;  %v39_v18 = vor.u32 %v38_v10, %v37_v9  ;;  %v60_v19 = vsub.f32 %v31_v8, %v23_v7 }
  0x18   :  { %v52_v11 = vmul.f32 0.2, %v51_v6  ;;  %v34_v15 = vld [vmem:[#allocation2 + $0x3] ss:$8 sm:$0x10]  ;;  %v27_v22 = vor.u32 %v26_v13, %v25_v12  ;;  %vm81_vm0 = vcmp.lt.s32.totalorder %v79_v37, 640 }
  0x19   :  { %v55_v17 = vld [vmem:[#allocation2 + $0x7] ss:$8 sm:$0xf]  ;;  %v35_v23 = vor.u32 %v34_v15, %v33_v14  ;;  %v43_v24 = vld [vmem:[#allocation2 + $0x5] ss:$8 sm:$0xf] }
  0x1a   :  { %v70_v16 = vmul.f32 1.442695, %v52_v11  ;;  %v56_v20 = vld [vmem:[#allocation2 + $0x7] ss:$8 sm:$0x10]  ;;  %v62_v28 = vmul.f32 0.5, %v60_v19 }
  0x1b   :  { %v57_v21 = vor.u32 %v56_v20, %v55_v17  ;;  %v44_v25 = vld [vmem:[#allocation2 + $0x5] ss:$8 sm:$0x10]  ;;  %v40_v27 = vmul.f32 0.1, %v39_v18  ;;  %v61_v31 = vsub.f32 %v35_v23, %v27_v22  ;;  %s99_s18 = sshll.u32 %s163_s0, 4  ;;  %s100_s18 = int_to_ptr.vmem [resolvable:$true] %s99_s18 }
  0x1c   :  { %110 = vpow2.f32 %v70_v16  ;;  %v45_v30 = vor.u32 %v44_v25, %v43_v24  ;;  %v63_v32 = vadd.f32 %v62_v28, %v23_v7  ;;  %s136_s19 = scalar_lea.vmem %s100_s18, 320  ;;  %p141_p9 = scmp.lt.s32.totalorder %s100_s18, %s100_s18 }
  0x1d   :  { %v58_v26 = vmul.f32 0.2, %v57_v21  ;;  %v66_v33 = vmul.f32 %v60_v19, %v40_v27  ;;  %v64_v35 = vmul.f32 0.5, %v61_v31  ;;  %p137_p8 = scmp.ne.s32.totalorder %s100_s18, %s136_s19  ;;  %p142_p10 = scmp.lt.s32.totalorder %s136_s19, %s136_s19 }
  0x1e   :  { %v46_v34 = vmul.f32 0.1, %v45_v30 }
  0x1f   :  { %v74_v29 = vmul.f32 1.442695, %v58_v26  ;;  %v67_v38 = vadd.f32 %v66_v33, %v63_v32  ;;  %v65_v41 = vadd.f32 %v64_v35, %v27_v22  ;;  %p143_p11 = por %p142_p10, %p141_p9 }
  0x20   :  { %v68_v42 = vmul.f32 %v61_v31, %v46_v34 }
  0x21   :  { %112 = vpow2.f32 %v74_v29  ;;  %p144_p12 = pnand %p143_p11, %p137_p8 }
  0x22   :  { %v69_v46 = vadd.f32 %v68_v42, %v65_v41 }
  0x26   :  { %v111_v36 = vpop.eup %110 }
  0x27   :  { %v72_v39 = vmul.f32 %v111_v36, %v60_v19 }
  0x29   :  { %v73_v40 = vmul.f32 0.5, %v72_v39 }
  0x2b   :  { %v78_v43 = vsub.f32 %v67_v38, %v73_v40  ;;  %v87_v44 = vadd.f32 %v73_v40, %v67_v38  ;;  %v113_v45 = vpop.eup %112 }
  0x2c   :  { %v76_v47 = vmul.f32 %v113_v45, %v61_v31 }
  0x2d   :  { %83 = vst.msk [vmem:[#allocation5] ss:$4 sm:$0x1f] %vm81_vm0, %v78_v43  ;;  %89 = vst.msk [vmem:[#allocation5 + $0x2] ss:$4 sm:$0x1f] %vm81_vm0, %v87_v44 }
  0x2e   :  { %v77_v48 = vmul.f32 0.5, %v76_v47 }
  0x30   :  { %v84_v49 = vsub.f32 %v69_v46, %v77_v48  ;;  %v90_v50 = vadd.f32 %v77_v48, %v69_v46 }
  0x32   :  { %86 = vst.msk [vmem:[#allocation5 + $0x1] ss:$4 sm:$0x1f] %vm81_vm0, %v84_v49  ;;  %92 = vst.msk [vmem:[#allocation5 + $0x3] ss:$4 sm:$0x1f] %vm81_vm0, %v90_v50 }
  0x33   :  { %147 = shalt.err (!%p144_p12)
}
  0x34   :  { %s148_s22 = scalar_lea.hbm %s199_s1, 320 }
  0x35   :  { %p149_p13 = scmp.ne.s32.totalorder %s199_s1, %s148_s22  ;;  %p152_p0 = scmp.lt.u32.totalorder %s148_s22, %s199_s1 }
  0x37   :  { %p154_p1 = pnand %p152_p0, %p149_p13 }
  0x39   :  { %157 = shalt.err (!%p154_p1)
}
  0x3a   :  { %102 = dma.vmem_to_hbm [thread:$0]  %s100_s18, 320, %s199_s1, [#allocation4]  }
  0x3b   :  { %160 = dma.done.wait [#allocation4], 320  }
  0x3c   :  { %161 = vsyncadd [#allocation4], 4294966976 }
  0x3d   :  { %106 = vsyncpa [#allocation3], 1 }
  0x3e   :  { %107 = vsyncpa [#allocation4], 1 }

</bundles_post_ra>
